<compile_context>
chip_gen: v5e
topology: v5e:2x2
jax: 0.10.0
libtpu: 0.0.40
codegen_flags: <defaults>
</compile_context>

<pallas_src>
import functools

import jax
import jax.numpy as jnp
from jax.experimental import pallas as pl
from jax.experimental.pallas import tpu as pltpu

_SUBLANE = 8


def _round_up(x, m):
    return (x + m - 1) // m * m


def _mlp_kernel(x_ref, w1_ref, b1_ref, w2_ref, b2_ref, w3_ref, b3_ref, q_ref):
    # All math in f32 (matches the fp32 PyTorch module); MXU accumulates in f32.
    x = x_ref[...]
    h1 = jnp.dot(x, w1_ref[...], preferred_element_type=jnp.float32) + b1_ref[...]
    h1 = jnp.maximum(h1, 0.0)
    h2 = jnp.dot(h1, w2_ref[...], preferred_element_type=jnp.float32) + b2_ref[...]
    h2 = jnp.maximum(h2, 0.0)
    q = jnp.dot(h2, w3_ref[...], preferred_element_type=jnp.float32) + b3_ref[...]
    q_ref[...] = q.astype(q_ref.dtype)


def _batch_tiling(batch, block_b):
    """Pick (batch tile, padded batch).

    - At least ceil(batch / block_b) tiles.
    - At least 2 tiles once each tile can hold a full sublane of rows, so the
      v7x megacore ("parallel" batch axis) has work for both TensorCores.
    - tb is a multiple of 8; padding is bounded by tb - 1 rows (and by 7 rows
      in the common single-tile case).
    """
    n = max(pl.cdiv(batch, block_b), 2 if batch >= 2 * _SUBLANE else 1)
    tb = _round_up(pl.cdiv(batch, n), _SUBLANE)
    b_p = _round_up(batch, tb)
    return tb, b_p


@functools.partial(jax.jit, static_argnames=("block_b", "out_dtype"))
def net_forward(s, w1, b1, w2, b2, w3, b3, block_b=512, out_dtype=jnp.float32):
    """Forward pass of Net. s: (B, state_dim) f32 -> (B, action_dim) out_dtype."""
    batch, state_dim = s.shape
    hidden = w1.shape[1]
    action_dim = w3.shape[1]

    # Biases as (1, features) rows; accept either (features,) or (1, features).
    b1 = jnp.reshape(b1, (1, hidden)).astype(jnp.float32)
    b2 = jnp.reshape(b2, (1, hidden)).astype(jnp.float32)
    b3 = jnp.reshape(b3, (1, action_dim)).astype(jnp.float32)
    w1 = w1.astype(jnp.float32)
    w2 = w2.astype(jnp.float32)
    w3 = w3.astype(jnp.float32)

    tb, b_p = _batch_tiling(batch, block_b)
    s_p = s.astype(jnp.float32)
    if b_p != batch:
        s_p = jnp.pad(s_p, ((0, b_p - batch), (0, 0)))  # zero rows -> sliced off
    grid = (b_p // tb,)

    # Weights/biases: block == full array dims, index_map constant -> resident
    # in VMEM across all batch tiles.
    resident = lambda shape: pl.BlockSpec(shape, lambda i: (0, 0))

    q = pl.pallas_call(
        _mlp_kernel,
        out_shape=jax.ShapeDtypeStruct((b_p, action_dim), out_dtype),
        grid=grid,
        in_specs=[
            pl.BlockSpec((tb, state_dim), lambda i: (i, 0)),   # x: tiled over batch
            resident((state_dim, hidden)), resident((1, hidden)),   # w1, b1
            resident((hidden, hidden)), resident((1, hidden)),      # w2, b2
            resident((hidden, action_dim)), resident((1, action_dim)),  # w3, b3
        ],
        out_specs=pl.BlockSpec((tb, action_dim), lambda i: (i, 0)),
        compiler_params=pltpu.CompilerParams(
            dimension_semantics=("parallel",)),
    )(s_p, w1, b1, w2, b2, w3, b3)

    if b_p != batch:
        q = q[:batch]
    return q


def init_params(key, state_dim, action_dim, hidden_width):
    """torch.nn.Linear-style init: U[-1/sqrt(fan_in), 1/sqrt(fan_in)].

    Weights are (in_features, out_features); biases are (1, out_features).
    """
    def linear(k, fan_in, fan_out):
        kw, kb = jax.random.split(k)
        bound = 1.0 / jnp.sqrt(fan_in)
        w = jax.random.uniform(kw, (fan_in, fan_out), jnp.float32, -bound, bound)
        b = jax.random.uniform(kb, (1, fan_out), jnp.float32, -bound, bound)
        return w, b

    k1, k2, k3 = jax.random.split(key, 3)
    w1, b1 = linear(k1, state_dim, hidden_width)
    w2, b2 = linear(k2, hidden_width, hidden_width)
    w3, b3 = linear(k3, hidden_width, action_dim)
    return w1, b1, w2, b2, w3, b3


def reference_forward(s, w1, b1, w2, b2, w3, b3):
    """Pure-JAX fp32 reference matching the PyTorch module semantics."""
    h1 = jnp.maximum(jnp.dot(s, w1) + b1.reshape(1, -1), 0.0)
    h2 = jnp.maximum(jnp.dot(h1, w2) + b2.reshape(1, -1), 0.0)
    return jnp.dot(h2, w3) + b3.reshape(1, -1)


if __name__ == "__main__":
    # Small shapes consistent with Net(state_dim, action_dim, hidden_width).
    batch, state_dim, action_dim, hidden_width = 2, 4, 4, 32

    key = jax.random.PRNGKey(0)
    k_params, k_input = jax.random.split(key)
    params = init_params(k_params, state_dim, action_dim, hidden_width)
    s = jax.random.normal(k_input, (batch, state_dim), jnp.float32)

    q = net_forward(s, *params)
    jax.block_until_ready(q)

    q_ref = reference_forward(s, *params)
    assert q.shape == (batch, action_dim)
    # Kernel keeps f32 weights and f32 accumulation; tolerance only covers the
    # MXU's default (bf16-pass) matmul precision vs. the XLA fp32 reference.
    assert jnp.allclose(q, q_ref, atol=3e-2, rtol=3e-2), (
        f"max abs err = {jnp.max(jnp.abs(q - q_ref))}")

    print("KERNEL_OK")
</pallas_src>

<mosaic_0001>
module attributes {stable_mosaic.version = 11 : i64} {
  func.func @_mlp_kernel(%arg0: i32, %arg1: memref<8x4xf32, #tpu.memory_space<vmem>>, %arg2: memref<4x32xf32, #tpu.memory_space<vmem>>, %arg3: memref<1x32xf32, #tpu.memory_space<vmem>>, %arg4: memref<32x32xf32, #tpu.memory_space<vmem>>, %arg5: memref<1x32xf32, #tpu.memory_space<vmem>>, %arg6: memref<32x4xf32, #tpu.memory_space<vmem>>, %arg7: memref<1x4xf32, #tpu.memory_space<vmem>>, %arg8: memref<8x4xf32, #tpu.memory_space<vmem>>) attributes {dimension_semantics = [#tpu.dimension_semantics<parallel>], iteration_bounds = array<i64: 1>, scalar_prefetch = 0 : i64, scratch_operands = 0 : i64, tpu.core_type = #tpu.core_type<tc>, window_params = [{transform_indices = @transform_0, window_bounds = array<i64: 8, 4>}, {pipeline_mode = #tpu.pipeline_mode<synchronous>, transform_indices = @transform_1, window_bounds = array<i64: 4, 32>}, {pipeline_mode = #tpu.pipeline_mode<synchronous>, transform_indices = @transform_2, window_bounds = array<i64: 1, 32>}, {pipeline_mode = #tpu.pipeline_mode<synchronous>, transform_indices = @transform_3, window_bounds = array<i64: 32, 32>}, {pipeline_mode = #tpu.pipeline_mode<synchronous>, transform_indices = @transform_4, window_bounds = array<i64: 1, 32>}, {pipeline_mode = #tpu.pipeline_mode<synchronous>, transform_indices = @transform_5, window_bounds = array<i64: 32, 4>}, {pipeline_mode = #tpu.pipeline_mode<synchronous>, transform_indices = @transform_6, window_bounds = array<i64: 1, 4>}, {transform_indices = @transform_7, window_bounds = array<i64: 8, 4>}]} {
    %c0 = arith.constant 0 : index
    %c0_0 = arith.constant 0 : index
    %0 = vector.load %arg1[%c0, %c0_0] : memref<8x4xf32, #tpu.memory_space<vmem>>, vector<8x4xf32>
    %c0_1 = arith.constant 0 : index
    %c0_2 = arith.constant 0 : index
    %1 = vector.load %arg2[%c0_1, %c0_2] : memref<4x32xf32, #tpu.memory_space<vmem>>, vector<4x32xf32>
    %cst = arith.constant dense<0.000000e+00> : vector<8x32xf32>
    %2 = tpu.matmul %0, %1, %cst {dimension_numbers = #tpu.dot_dimension_numbers<[1], [0], [0], [1], [0, 0, 1, 1], [], []>} : vector<8x4xf32>, vector<4x32xf32>, vector<8x32xf32> -> vector<8x32xf32>
    %c0_3 = arith.constant 0 : index
    %c0_4 = arith.constant 0 : index
    %3 = vector.load %arg3[%c0_3, %c0_4] : memref<1x32xf32, #tpu.memory_space<vmem>>, vector<1x32xf32>
    %4 = vector.broadcast %3 : vector<1x32xf32> to vector<8x32xf32>
    %5 = arith.addf %2, %4 : vector<8x32xf32>
    %cst_5 = arith.constant 0.000000e+00 : f32
    %6 = vector.broadcast %cst_5 : f32 to vector<8x32xf32>
    %7 = arith.maximumf %5, %6 : vector<8x32xf32>
    %c0_6 = arith.constant 0 : index
    %c0_7 = arith.constant 0 : index
    %8 = vector.load %arg4[%c0_6, %c0_7] : memref<32x32xf32, #tpu.memory_space<vmem>>, vector<32x32xf32>
    %cst_8 = arith.constant dense<0.000000e+00> : vector<8x32xf32>
    %9 = tpu.matmul %7, %8, %cst_8 {dimension_numbers = #tpu.dot_dimension_numbers<[1], [0], [0], [1], [0, 0, 1, 1], [], []>} : vector<8x32xf32>, vector<32x32xf32>, vector<8x32xf32> -> vector<8x32xf32>
    %c0_9 = arith.constant 0 : index
    %c0_10 = arith.constant 0 : index
    %10 = vector.load %arg5[%c0_9, %c0_10] : memref<1x32xf32, #tpu.memory_space<vmem>>, vector<1x32xf32>
    %11 = vector.broadcast %10 : vector<1x32xf32> to vector<8x32xf32>
    %12 = arith.addf %9, %11 : vector<8x32xf32>
    %cst_11 = arith.constant 0.000000e+00 : f32
    %13 = vector.broadcast %cst_11 : f32 to vector<8x32xf32>
    %14 = arith.maximumf %12, %13 : vector<8x32xf32>
    %c0_12 = arith.constant 0 : index
    %c0_13 = arith.constant 0 : index
    %15 = vector.load %arg6[%c0_12, %c0_13] : memref<32x4xf32, #tpu.memory_space<vmem>>, vector<32x4xf32>
    %cst_14 = arith.constant dense<0.000000e+00> : vector<8x4xf32>
    %16 = tpu.matmul %14, %15, %cst_14 {dimension_numbers = #tpu.dot_dimension_numbers<[1], [0], [0], [1], [0, 0, 1, 1], [], []>} : vector<8x32xf32>, vector<32x4xf32>, vector<8x4xf32> -> vector<8x4xf32>
    %c0_15 = arith.constant 0 : index
    %c0_16 = arith.constant 0 : index
    %17 = vector.load %arg7[%c0_15, %c0_16] : memref<1x4xf32, #tpu.memory_space<vmem>>, vector<1x4xf32>
    %18 = vector.broadcast %17 : vector<1x4xf32> to vector<8x4xf32>
    %19 = arith.addf %16, %18 : vector<8x4xf32>
    %c0_17 = arith.constant 0 : index
    %c0_18 = arith.constant 0 : index
    %20 = vector.load %arg8[%c0_17, %c0_18] : memref<8x4xf32, #tpu.memory_space<vmem>>, vector<8x4xf32>
    tpu.vector_store %arg8[%c0_17, %c0_18], %19 {strides = array<i32>} : memref<8x4xf32, #tpu.memory_space<vmem>>, vector<8x4xf32>,
    return
  }
  func.func @transform_0(%arg0: i32) -> (i32, i32) {
    %c0_i32 = arith.constant 0 : i32
    %c0_i32_0 = arith.constant 0 : i32
    return %arg0, %c0_i32 : i32, i32
  }
  func.func @transform_1(%arg0: i32) -> (i32, i32) {
    %c0_i32 = arith.constant 0 : i32
    %c0_i32_0 = arith.constant 0 : i32
    %c0_i32_1 = arith.constant 0 : i32
    return %c0_i32, %c0_i32_0 : i32, i32
  }
  func.func @transform_2(%arg0: i32) -> (i32, i32) {
    %c0_i32 = arith.constant 0 : i32
    %c0_i32_0 = arith.constant 0 : i32
    %c0_i32_1 = arith.constant 0 : i32
    return %c0_i32, %c0_i32_0 : i32, i32
  }
  func.func @transform_3(%arg0: i32) -> (i32, i32) {
    %c0_i32 = arith.constant 0 : i32
    %c0_i32_0 = arith.constant 0 : i32
    %c0_i32_1 = arith.constant 0 : i32
    return %c0_i32, %c0_i32_0 : i32, i32
  }
  func.func @transform_4(%arg0: i32) -> (i32, i32) {
    %c0_i32 = arith.constant 0 : i32
    %c0_i32_0 = arith.constant 0 : i32
    %c0_i32_1 = arith.constant 0 : i32
    return %c0_i32, %c0_i32_0 : i32, i32
  }
  func.func @transform_5(%arg0: i32) -> (i32, i32) {
    %c0_i32 = arith.constant 0 : i32
    %c0_i32_0 = arith.constant 0 : i32
    %c0_i32_1 = arith.constant 0 : i32
    return %c0_i32, %c0_i32_0 : i32, i32
  }
  func.func @transform_6(%arg0: i32) -> (i32, i32) {
    %c0_i32 = arith.constant 0 : i32
    %c0_i32_0 = arith.constant 0 : i32
    %c0_i32_1 = arith.constant 0 : i32
    return %c0_i32, %c0_i32_0 : i32, i32
  }
  func.func @transform_7(%arg0: i32) -> (i32, i32) {
    %c0_i32 = arith.constant 0 : i32
    %c0_i32_0 = arith.constant 0 : i32
    return %arg0, %c0_i32 : i32, i32
  }
}

</mosaic_0001>

<bundles_post_ra>
// kernel: net_forward.1
= control target key start
LH: loop header
LB: loop body
LE: loop exit
PB: predicated region body
PF: predicated region fallthrough
CT: control target
= control target key end

     0   :  { %vm36_vm0 = vcmask 1043456   ;;  %vm32_vm1 = vcmask 31744   ;;  %vm69_vm2 = vcmask 261120   ;;  %s221_s1 = inlined_call_operand.vmem [shape: f32[4,32], index: 1, kind: input, shape index: {}]   ;;  %s222_s0 = inlined_call_operand.vmem [shape: f32[8,4], index: 0, kind: input, shape index: {}]   ;;  %s223_s3 = inlined_call_operand.vmem [shape: f32[32,32], index: 3, kind: input, shape index: {}]   ;;  %s224_s2 = inlined_call_operand.vmem [shape: f32[1,32], index: 2, kind: input, shape index: {}]   ;;  %s225_s4 = inlined_call_operand.vmem [shape: f32[1,32], index: 4, kind: input, shape index: {}]   ;;  %s226_s5 = inlined_call_operand.vmem [shape: f32[32,4], index: 5, kind: input, shape index: {}]   ;;  %s227_s6 = inlined_call_operand.vmem [shape: f32[1,4], index: 6, kind: input, shape index: {}]   ;;  %s228_s7 = inlined_call_operand.vmem [shape: f32[8,4], index: 7, kind: output, shape index: {}]  }
   0x1   :  { %v27_v0 = vld [vmem:[%s221_s1] sm:$0xf]  ;;  %v64_v2 = vld [vmem:[%s223_s3 + $0x18] sm:$0xff]  ;;  %v63_v3 = vld [vmem:[%s223_s3 + $0x10] sm:$0xff] }
   0x2   :  { %v26_v1 = vld [vmem:[%s222_s0] sm:$0xff]  ;;  %130 = vmatpush.msk.msra.mxu0 %vm36_vm0, %v27_v0  ;;  %85 = vmatpush.msra.mxu1 %v64_v2  ;;  %v62_v4 = vld [vmem:[%s223_s3 + $0x8] sm:$0xff]  ;;  %v97_v6 = vld [vmem:[%s226_s5 + $0x18] sm:$0xff] }
   0x3   :  { %131 = vmatmul.msk.f32.vlgmr.msra.gmra.mxu0 %vm32_vm1, %v26_v1  ;;  %v61_v5 = vld [vmem:[%s223_s3] sm:$0xff]  ;;  %117 = vmatpush.msra.mxu2 %v97_v6  ;;  %v96_v11 = vld [vmem:[%s226_s5 + $0x10] sm:$0xff]  ;;  %v95_v12 = vld [vmem:[%s226_s5 + $0x8] sm:$0xff] }
   0x4   :  { %86 = vmatpush.msra.mxu1 %v63_v3  ;;  %v134_v7 = vld [vmem:[%s224_s2] ss:$0 sm:$0xff] }
   0x5   :  { %118 = vmatpush.msra.mxu2 %v96_v11  ;;  %v94_v13 = vld [vmem:[%s226_s5] sm:$0xff] }
   0x6   :  { %87 = vmatpush.msra.mxu1 %v62_v4  ;;  %v135_v14 = vld [vmem:[%s225_s4] ss:$0 sm:$0xff] }
   0x7   :  { %119 = vmatpush.msra.mxu2 %v95_v12  ;;  %v136_v18 = vld [vmem:[%s227_s6] ss:$0 sm:$0xff] }
   0x8   :  { %88 = vmatpush.msra.mxu1 %v61_v5 }
   0x9   :  { %120 = vmatpush.msra.mxu2 %v94_v13 }
  0x80   :  { %v57_v8 = vpop.f32.mrf.mxu0 }
  0x81   :  { %v58_v9 = vadd.f32 %v134_v7, %v57_v8 }
  0x83   :  { %v60_v10 = vmax.f32 %v58_v9, 0.0 }
  0x85   :  { %132 = vmatmul.msk.f32.vlgmr.msra.gmra.mxu1 %vm69_vm2, %v60_v10 }
 0x102   :  { %v90_v15 = vpop.f32.mrf.mxu1 }
 0x103   :  { %v91_v16 = vadd.f32 %v135_v14, %v90_v15 }
 0x105   :  { %v93_v17 = vmax.f32 %v91_v16, 0.0 }
 0x107   :  { %133 = vmatmul.msk.f32.vlgmr.msra.gmra.mxu2 %vm69_vm2, %v93_v17 }
 0x18a   :  { %v122_v19 = vpop.f32.mrf.mxu2 }
 0x18b   :  { %v123_v20 = vadd.f32 %v136_v18, %v122_v19 }
 0x18d   :  { %125 = vst.msk [vmem:[%s228_s7] sm:$0xff] %vm32_vm1, %v123_v20 }

</bundles_post_ra>
